<compile_context>
chip_gen: v7x
topology: tpu7x:2x2x1
jax: 0.10.0
libtpu: 0.0.40
codegen_flags: <defaults>
</compile_context>

<pallas_src>
import functools
import math

import jax
import jax.numpy as jnp
from jax.experimental import pallas as pl
from jax.experimental.pallas import tpu as pltpu


def _attention_kernel(
    x_ref,      # (1, C, L)          input block, native PyTorch layout
    wqkv_ref,   # (3, H, hd, C)      fused+scaled [q;k;v] per-head weights
    bqkv_ref,   # (3, H, hd, 1)      fused+scaled [q;k;v] per-head biases
    wo_ref,     # (H, C, hd)         out-proj weight, per-head column blocks
    bo_ref,     # (C, 1)             out-proj bias
    out_ref,    # (1, C, L)
    *, nheads: int,
):
    f32 = jnp.float32
    x = x_ref[0]                          # (C, L)  -- channels on sublanes, seq on lanes

    # Load the (tiny) fused weights once; all later indexing is on major dims only.
    wqkv = wqkv_ref[...]                  # (3, H, hd, C)
    bqkv = bqkv_ref[...]                  # (3, H, hd, 1)
    wo = wo_ref[...]                      # (H, C, hd)

    # Residual + out-proj bias seed the accumulator.
    acc = x + bo_ref[...]                 # (C, L)

    for h in range(nheads):               # static, small head count -> fully unrolled
        # Per-head projections, computed directly in transposed (feature, seq) space.
        qT = jnp.dot(wqkv[0, h], x, preferred_element_type=f32) + bqkv[0, h]   # (hd, L), scale folded in
        kT = jnp.dot(wqkv[1, h], x, preferred_element_type=f32) + bqkv[1, h]   # (hd, L)
        vT = jnp.dot(wqkv[2, h], x, preferred_element_type=f32) + bqkv[2, h]   # (hd, L)

        # scores[i, j] = q_i . k_j  (scale already applied to q)
        s = jnp.dot(qT.T, kT, preferred_element_type=f32)                      # (L, L)
        m = jnp.max(s, axis=-1, keepdims=True)
        e = jnp.exp(s - m)
        p = e * pl.reciprocal(jnp.sum(e, axis=-1, keepdims=True), approx=True)  # softmax over keys

        # o^T = v^T @ p^T   (head output, transposed layout)
        oT = jnp.dot(vT, p.T, preferred_element_type=f32)                      # (hd, L)

        # Accumulate this head's contribution of the out-projection.
        acc = acc + jnp.dot(wo[h], oT, preferred_element_type=f32)             # (C, L)

    out_ref[0] = acc.astype(out_ref.dtype)


def attention_module_forward(x_bcl, fused, nheads):
    """x_bcl: (B, C, L) float32 (PyTorch layout). Returns (B, C, L)."""
    B, C, L = x_bcl.shape
    H = nheads
    hd = C // H

    kernel = functools.partial(_attention_kernel, nheads=nheads)

    return pl.pallas_call(
        kernel,
        out_shape=jax.ShapeDtypeStruct((B, C, L), jnp.float32),
        grid_spec=pltpu.PrefetchScalarGridSpec(
            num_scalar_prefetch=0,
            grid=(B,),
            in_specs=[
                pl.BlockSpec((1, C, L), lambda b: (b, 0, 0)),
                pl.BlockSpec((3, H, hd, C), lambda b: (0, 0, 0, 0)),
                pl.BlockSpec((3, H, hd, 1), lambda b: (0, 0, 0, 0)),
                pl.BlockSpec((H, C, hd), lambda b: (0, 0, 0)),
                pl.BlockSpec((C, 1), lambda b: (0, 0)),
            ],
            out_specs=pl.BlockSpec((1, C, L), lambda b: (b, 0, 0)),
        ),
        compiler_params=pltpu.CompilerParams(dimension_semantics=("parallel",)),
    )(x_bcl, fused["w_qkv"], fused["b_qkv"], fused["wo_heads"], fused["bo_col"])


def make_params(key, n_channels):
    """Raw, PyTorch-shaped parameters (nn.Linear convention: y = x @ W.T + b)."""
    C = n_channels
    ks = jax.random.split(key, 10)
    s = 1.0 / math.sqrt(C)

    def u(k, shape):
        return jax.random.uniform(k, shape, jnp.float32, -s, s)

    return dict(
        wk=u(ks[0], (C, C)), bk=u(ks[1], (C,)),
        wq=u(ks[2], (C, C)), bq=u(ks[3], (C,)),
        wv=u(ks[4], (C, C)), bv=u(ks[5], (C,)),
        in_proj_w=u(ks[6], (3 * C, C)), in_proj_b=u(ks[7], (3 * C,)),
        wo=u(ks[8], (C, C)), bo=u(ks[9], (C,)),
    )


def fuse_params(raw, nheads):
    """Host-side fusion: pre-proj ∘ in-proj, scale folded into q, head-major layout."""
    C = raw["wq"].shape[0]
    hd = C // nheads
    scale = 1.0 / math.sqrt(hd)

    wiq, wik, wiv = (raw["in_proj_w"][i * C:(i + 1) * C] for i in range(3))
    biq, bik, biv = (raw["in_proj_b"][i * C:(i + 1) * C] for i in range(3))

    # q = (x @ Wq^T + bq) @ Wiq^T + biq = x @ (Wiq Wq)^T + (Wiq bq + biq); scale folded in.
    w_q = (wiq @ raw["wq"]) * scale
    b_q = (wiq @ raw["bq"] + biq) * scale
    w_k = wik @ raw["wk"]
    b_k = wik @ raw["bk"] + bik
    w_v = wiv @ raw["wv"]
    b_v = wiv @ raw["bv"] + biv

    w_qkv = jnp.stack([w_q, w_k, w_v]).reshape(3, nheads, hd, C)     # (3, H, hd, C)
    b_qkv = jnp.stack([b_q, b_k, b_v]).reshape(3, nheads, hd, 1)     # (3, H, hd, 1)
    wo_heads = raw["wo"].reshape(C, nheads, hd).transpose(1, 0, 2)   # (H, C, hd)
    bo_col = raw["bo"].reshape(C, 1)                                 # (C, 1)

    return dict(w_qkv=w_qkv, b_qkv=b_qkv, wo_heads=wo_heads, bo_col=bo_col)


def reference_forward(x_bcl, raw, nheads):
    """Pure-JAX reference mirroring PyTorch semantics, built from the RAW params."""
    B, C, L = x_bcl.shape
    hd = C // nheads
    xt = jnp.transpose(x_bcl, (0, 2, 1))                  # (B, L, C)

    k0 = xt @ raw["wk"].T + raw["bk"]
    q0 = xt @ raw["wq"].T + raw["bq"]
    v0 = xt @ raw["wv"].T + raw["bv"]

    wiq, wik, wiv = (raw["in_proj_w"][i * C:(i + 1) * C] for i in range(3))
    biq, bik, biv = (raw["in_proj_b"][i * C:(i + 1) * C] for i in range(3))
    q = q0 @ wiq.T + biq
    k = k0 @ wik.T + bik
    v = v0 @ wiv.T + biv

    qh = q.reshape(B, L, nheads, hd).transpose(0, 2, 1, 3)
    kh = k.reshape(B, L, nheads, hd).transpose(0, 2, 1, 3)
    vh = v.reshape(B, L, nheads, hd).transpose(0, 2, 1, 3)
    s = jnp.einsum("bhqd,bhkd->bhqk", qh, kh) / math.sqrt(hd)
    p = jax.nn.softmax(s, axis=-1)
    o = jnp.einsum("bhqk,bhkd->bhqd", p, vh).transpose(0, 2, 1, 3).reshape(B, L, C)
    o = o @ raw["wo"].T + raw["bo"]
    return jnp.transpose(o + xt, (0, 2, 1))               # (B, C, L)


if __name__ == "__main__":
    # input_length=8, n_channels=32, nheads=4, batch=2
    B, C, L, NHEADS = 2, 32, 8, 4

    key = jax.random.PRNGKey(0)
    k_x, k_p = jax.random.split(key)
    x = jax.random.normal(k_x, (B, C, L), jnp.float32)    # PyTorch layout (B, C, L)
    raw = make_params(k_p, C)
    fused = fuse_params(raw, NHEADS)

    out = attention_module_forward(x, fused, NHEADS)
    out = jax.block_until_ready(out)

    ref = reference_forward(x, raw, NHEADS)
    assert out.shape == (B, C, L)
    # Tolerance covers fused-GEMM re-association + EUP approx reciprocal in softmax.
    assert jnp.allclose(out, ref, atol=1e-3, rtol=1e-3), "Pallas kernel mismatch vs reference"

    # TODO(synk): with_weights=True path (returning averaged attention weights) not implemented.
    print("KERNEL_OK")
</pallas_src>

<mosaic_0001>
module attributes {stable_mosaic.version = 11 : i64} {
  func.func @_attention_kernel(%arg0: i32, %arg1: memref<1x32x8xf32, #tpu.memory_space<vmem>>, %arg2: memref<3x4x8x32xf32, #tpu.memory_space<vmem>>, %arg3: memref<3x4x8x1xf32, #tpu.memory_space<vmem>>, %arg4: memref<4x32x8xf32, #tpu.memory_space<vmem>>, %arg5: memref<32x1xf32, #tpu.memory_space<vmem>>, %arg6: memref<1x32x8xf32, #tpu.memory_space<vmem>>) attributes {dimension_semantics = [#tpu.dimension_semantics<parallel>], iteration_bounds = array<i64: 2>, scalar_prefetch = 0 : i64, scratch_operands = 0 : i64, tpu.core_type = #tpu.core_type<tc>, window_params = [{transform_indices = @transform_0, window_bounds = array<i64: 1, 32, 8>}, {pipeline_mode = #tpu.pipeline_mode<synchronous>, transform_indices = @transform_1, window_bounds = array<i64: 3, 4, 8, 32>}, {pipeline_mode = #tpu.pipeline_mode<synchronous>, transform_indices = @transform_2, window_bounds = array<i64: 3, 4, 8, 1>}, {pipeline_mode = #tpu.pipeline_mode<synchronous>, transform_indices = @transform_3, window_bounds = array<i64: 4, 32, 8>}, {pipeline_mode = #tpu.pipeline_mode<synchronous>, transform_indices = @transform_4, window_bounds = array<i64: 32, 1>}, {transform_indices = @transform_5, window_bounds = array<i64: 1, 32, 8>}]} {
    %c0 = arith.constant 0 : index
    %c0_0 = arith.constant 0 : index
    %c0_1 = arith.constant 0 : index
    %0 = vector.load %arg1[%c0, %c0_0, %c0_1] : memref<1x32x8xf32, #tpu.memory_space<vmem>>, vector<1x32x8xf32>
    %1 = vector.shape_cast %0 : vector<1x32x8xf32> to vector<32x8xf32>
    %c0_2 = arith.constant 0 : index
    %c0_3 = arith.constant 0 : index
    %c0_4 = arith.constant 0 : index
    %c0_5 = arith.constant 0 : index
    %2 = vector.load %arg2[%c0_2, %c0_3, %c0_4, %c0_5] : memref<3x4x8x32xf32, #tpu.memory_space<vmem>>, vector<3x4x8x32xf32>
    %c0_6 = arith.constant 0 : index
    %c0_7 = arith.constant 0 : index
    %c0_8 = arith.constant 0 : index
    %c0_9 = arith.constant 0 : index
    %3 = vector.load %arg3[%c0_6, %c0_7, %c0_8, %c0_9] : memref<3x4x8x1xf32, #tpu.memory_space<vmem>>, vector<3x4x8x1xf32>
    %c0_10 = arith.constant 0 : index
    %c0_11 = arith.constant 0 : index
    %c0_12 = arith.constant 0 : index
    %4 = vector.load %arg4[%c0_10, %c0_11, %c0_12] : memref<4x32x8xf32, #tpu.memory_space<vmem>>, vector<4x32x8xf32>
    %c0_13 = arith.constant 0 : index
    %c0_14 = arith.constant 0 : index
    %5 = vector.load %arg5[%c0_13, %c0_14] : memref<32x1xf32, #tpu.memory_space<vmem>>, vector<32x1xf32>
    %6 = vector.broadcast %5 : vector<32x1xf32> to vector<32x8xf32>
    %7 = arith.addf %1, %6 : vector<32x8xf32>
    %8 = vector.extract_strided_slice %2 {offsets = [0, 0, 0, 0], sizes = [1, 1, 8, 32], strides = [1, 1, 1, 1]} : vector<3x4x8x32xf32> to vector<1x1x8x32xf32>
    %9 = vector.shape_cast %8 : vector<1x1x8x32xf32> to vector<8x32xf32>
    %cst = arith.constant dense<0.000000e+00> : vector<8x8xf32>
    %10 = tpu.matmul %9, %1, %cst {dimension_numbers = #tpu.dot_dimension_numbers<[1], [0], [0], [1], [0, 0, 1, 1], [], []>} : vector<8x32xf32>, vector<32x8xf32>, vector<8x8xf32> -> vector<8x8xf32>
    %11 = vector.extract_strided_slice %3 {offsets = [0, 0, 0, 0], sizes = [1, 1, 8, 1], strides = [1, 1, 1, 1]} : vector<3x4x8x1xf32> to vector<1x1x8x1xf32>
    %12 = vector.shape_cast %11 : vector<1x1x8x1xf32> to vector<8x1xf32>
    %13 = vector.broadcast %12 : vector<8x1xf32> to vector<8x8xf32>
    %14 = arith.addf %10, %13 : vector<8x8xf32>
    %15 = vector.extract_strided_slice %2 {offsets = [1, 0, 0, 0], sizes = [1, 1, 8, 32], strides = [1, 1, 1, 1]} : vector<3x4x8x32xf32> to vector<1x1x8x32xf32>
    %16 = vector.shape_cast %15 : vector<1x1x8x32xf32> to vector<8x32xf32>
    %cst_15 = arith.constant dense<0.000000e+00> : vector<8x8xf32>
    %17 = tpu.matmul %16, %1, %cst_15 {dimension_numbers = #tpu.dot_dimension_numbers<[1], [0], [0], [1], [0, 0, 1, 1], [], []>} : vector<8x32xf32>, vector<32x8xf32>, vector<8x8xf32> -> vector<8x8xf32>
    %18 = vector.extract_strided_slice %3 {offsets = [1, 0, 0, 0], sizes = [1, 1, 8, 1], strides = [1, 1, 1, 1]} : vector<3x4x8x1xf32> to vector<1x1x8x1xf32>
    %19 = vector.shape_cast %18 : vector<1x1x8x1xf32> to vector<8x1xf32>
    %20 = vector.broadcast %19 : vector<8x1xf32> to vector<8x8xf32>
    %21 = arith.addf %17, %20 : vector<8x8xf32>
    %22 = vector.extract_strided_slice %2 {offsets = [2, 0, 0, 0], sizes = [1, 1, 8, 32], strides = [1, 1, 1, 1]} : vector<3x4x8x32xf32> to vector<1x1x8x32xf32>
    %23 = vector.shape_cast %22 : vector<1x1x8x32xf32> to vector<8x32xf32>
    %cst_16 = arith.constant dense<0.000000e+00> : vector<8x8xf32>
    %24 = tpu.matmul %23, %1, %cst_16 {dimension_numbers = #tpu.dot_dimension_numbers<[1], [0], [0], [1], [0, 0, 1, 1], [], []>} : vector<8x32xf32>, vector<32x8xf32>, vector<8x8xf32> -> vector<8x8xf32>
    %25 = vector.extract_strided_slice %3 {offsets = [2, 0, 0, 0], sizes = [1, 1, 8, 1], strides = [1, 1, 1, 1]} : vector<3x4x8x1xf32> to vector<1x1x8x1xf32>
    %26 = vector.shape_cast %25 : vector<1x1x8x1xf32> to vector<8x1xf32>
    %27 = vector.broadcast %26 : vector<8x1xf32> to vector<8x8xf32>
    %28 = arith.addf %24, %27 : vector<8x8xf32>
    %29 = tpu.transpose %14, [1, 0] : vector<8x8xf32> -> vector<8x8xf32>
    %cst_17 = arith.constant dense<0.000000e+00> : vector<8x8xf32>
    %30 = tpu.matmul %29, %21, %cst_17 {dimension_numbers = #tpu.dot_dimension_numbers<[1], [0], [0], [1], [0, 0, 1, 1], [], []>} : vector<8x8xf32>, vector<8x8xf32>, vector<8x8xf32> -> vector<8x8xf32>
    %cst_18 = arith.constant dense<0xFF800000> : vector<8xf32>
    %31 = vector.multi_reduction <maximumf>, %30, %cst_18 [1] : vector<8x8xf32> to vector<8xf32>
    %32 = vector.shape_cast %31 : vector<8xf32> to vector<8x1xf32>
    %33 = vector.broadcast %32 : vector<8x1xf32> to vector<8x8xf32>
    %34 = arith.subf %30, %33 : vector<8x8xf32>
    %35 = math.exp %34 : vector<8x8xf32>
    %cst_19 = arith.constant dense<0.000000e+00> : vector<8xf32>
    %36 = vector.multi_reduction <add>, %35, %cst_19 [1] : vector<8x8xf32> to vector<8xf32>
    %37 = vector.shape_cast %36 : vector<8xf32> to vector<8x1xf32>
    %38 = tpu.reciprocal %37 {approx = true} : vector<8x1xf32> -> vector<8x1xf32>
    %39 = vector.broadcast %38 : vector<8x1xf32> to vector<8x8xf32>
    %40 = arith.mulf %35, %39 : vector<8x8xf32>
    %41 = tpu.transpose %40, [1, 0] : vector<8x8xf32> -> vector<8x8xf32>
    %cst_20 = arith.constant dense<0.000000e+00> : vector<8x8xf32>
    %42 = tpu.matmul %28, %41, %cst_20 {dimension_numbers = #tpu.dot_dimension_numbers<[1], [0], [0], [1], [0, 0, 1, 1], [], []>} : vector<8x8xf32>, vector<8x8xf32>, vector<8x8xf32> -> vector<8x8xf32>
    %43 = vector.extract_strided_slice %4 {offsets = [0, 0, 0], sizes = [1, 32, 8], strides = [1, 1, 1]} : vector<4x32x8xf32> to vector<1x32x8xf32>
    %44 = vector.shape_cast %43 : vector<1x32x8xf32> to vector<32x8xf32>
    %cst_21 = arith.constant dense<0.000000e+00> : vector<32x8xf32>
    %45 = tpu.matmul %44, %42, %cst_21 {dimension_numbers = #tpu.dot_dimension_numbers<[1], [0], [0], [1], [0, 0, 1, 1], [], []>} : vector<32x8xf32>, vector<8x8xf32>, vector<32x8xf32> -> vector<32x8xf32>
    %46 = arith.addf %7, %45 : vector<32x8xf32>
    %47 = vector.extract_strided_slice %2 {offsets = [0, 1, 0, 0], sizes = [1, 1, 8, 32], strides = [1, 1, 1, 1]} : vector<3x4x8x32xf32> to vector<1x1x8x32xf32>
    %48 = vector.shape_cast %47 : vector<1x1x8x32xf32> to vector<8x32xf32>
    %cst_22 = arith.constant dense<0.000000e+00> : vector<8x8xf32>
    %49 = tpu.matmul %48, %1, %cst_22 {dimension_numbers = #tpu.dot_dimension_numbers<[1], [0], [0], [1], [0, 0, 1, 1], [], []>} : vector<8x32xf32>, vector<32x8xf32>, vector<8x8xf32> -> vector<8x8xf32>
    %50 = vector.extract_strided_slice %3 {offsets = [0, 1, 0, 0], sizes = [1, 1, 8, 1], strides = [1, 1, 1, 1]} : vector<3x4x8x1xf32> to vector<1x1x8x1xf32>
    %51 = vector.shape_cast %50 : vector<1x1x8x1xf32> to vector<8x1xf32>
    %52 = vector.broadcast %51 : vector<8x1xf32> to vector<8x8xf32>
    %53 = arith.addf %49, %52 : vector<8x8xf32>
    %54 = vector.extract_strided_slice %2 {offsets = [1, 1, 0, 0], sizes = [1, 1, 8, 32], strides = [1, 1, 1, 1]} : vector<3x4x8x32xf32> to vector<1x1x8x32xf32>
    %55 = vector.shape_cast %54 : vector<1x1x8x32xf32> to vector<8x32xf32>
    %cst_23 = arith.constant dense<0.000000e+00> : vector<8x8xf32>
    %56 = tpu.matmul %55, %1, %cst_23 {dimension_numbers = #tpu.dot_dimension_numbers<[1], [0], [0], [1], [0, 0, 1, 1], [], []>} : vector<8x32xf32>, vector<32x8xf32>, vector<8x8xf32> -> vector<8x8xf32>
    %57 = vector.extract_strided_slice %3 {offsets = [1, 1, 0, 0], sizes = [1, 1, 8, 1], strides = [1, 1, 1, 1]} : vector<3x4x8x1xf32> to vector<1x1x8x1xf32>
    %58 = vector.shape_cast %57 : vector<1x1x8x1xf32> to vector<8x1xf32>
    %59 = vector.broadcast %58 : vector<8x1xf32> to vector<8x8xf32>
    %60 = arith.addf %56, %59 : vector<8x8xf32>
    %61 = vector.extract_strided_slice %2 {offsets = [2, 1, 0, 0], sizes = [1, 1, 8, 32], strides = [1, 1, 1, 1]} : vector<3x4x8x32xf32> to vector<1x1x8x32xf32>
    %62 = vector.shape_cast %61 : vector<1x1x8x32xf32> to vector<8x32xf32>
    %cst_24 = arith.constant dense<0.000000e+00> : vector<8x8xf32>
    %63 = tpu.matmul %62, %1, %cst_24 {dimension_numbers = #tpu.dot_dimension_numbers<[1], [0], [0], [1], [0, 0, 1, 1], [], []>} : vector<8x32xf32>, vector<32x8xf32>, vector<8x8xf32> -> vector<8x8xf32>
    %64 = vector.extract_strided_slice %3 {offsets = [2, 1, 0, 0], sizes = [1, 1, 8, 1], strides = [1, 1, 1, 1]} : vector<3x4x8x1xf32> to vector<1x1x8x1xf32>
    %65 = vector.shape_cast %64 : vector<1x1x8x1xf32> to vector<8x1xf32>
    %66 = vector.broadcast %65 : vector<8x1xf32> to vector<8x8xf32>
    %67 = arith.addf %63, %66 : vector<8x8xf32>
    %68 = tpu.transpose %53, [1, 0] : vector<8x8xf32> -> vector<8x8xf32>
    %cst_25 = arith.constant dense<0.000000e+00> : vector<8x8xf32>
    %69 = tpu.matmul %68, %60, %cst_25 {dimension_numbers = #tpu.dot_dimension_numbers<[1], [0], [0], [1], [0, 0, 1, 1], [], []>} : vector<8x8xf32>, vector<8x8xf32>, vector<8x8xf32> -> vector<8x8xf32>
    %cst_26 = arith.constant dense<0xFF800000> : vector<8xf32>
    %70 = vector.multi_reduction <maximumf>, %69, %cst_26 [1] : vector<8x8xf32> to vector<8xf32>
    %71 = vector.shape_cast %70 : vector<8xf32> to vector<8x1xf32>
    %72 = vector.broadcast %71 : vector<8x1xf32> to vector<8x8xf32>
    %73 = arith.subf %69, %72 : vector<8x8xf32>
    %74 = math.exp %73 : vector<8x8xf32>
    %cst_27 = arith.constant dense<0.000000e+00> : vector<8xf32>
    %75 = vector.multi_reduction <add>, %74, %cst_27 [1] : vector<8x8xf32> to vector<8xf32>
    %76 = vector.shape_cast %75 : vector<8xf32> to vector<8x1xf32>
    %77 = tpu.reciprocal %76 {approx = true} : vector<8x1xf32> -> vector<8x1xf32>
    %78 = vector.broadcast %77 : vector<8x1xf32> to vector<8x8xf32>
    %79 = arith.mulf %74, %78 : vector<8x8xf32>
    %80 = tpu.transpose %79, [1, 0] : vector<8x8xf32> -> vector<8x8xf32>
    %cst_28 = arith.constant dense<0.000000e+00> : vector<8x8xf32>
    %81 = tpu.matmul %67, %80, %cst_28 {dimension_numbers = #tpu.dot_dimension_numbers<[1], [0], [0], [1], [0, 0, 1, 1], [], []>} : vector<8x8xf32>, vector<8x8xf32>, vector<8x8xf32> -> vector<8x8xf32>
    %82 = vector.extract_strided_slice %4 {offsets = [1, 0, 0], sizes = [1, 32, 8], strides = [1, 1, 1]} : vector<4x32x8xf32> to vector<1x32x8xf32>
    %83 = vector.shape_cast %82 : vector<1x32x8xf32> to vector<32x8xf32>
    %cst_29 = arith.constant dense<0.000000e+00> : vector<32x8xf32>
    %84 = tpu.matmul %83, %81, %cst_29 {dimension_numbers = #tpu.dot_dimension_numbers<[1], [0], [0], [1], [0, 0, 1, 1], [], []>} : vector<32x8xf32>, vector<8x8xf32>, vector<32x8xf32> -> vector<32x8xf32>
    %85 = arith.addf %46, %84 : vector<32x8xf32>
    %86 = vector.extract_strided_slice %2 {offsets = [0, 2, 0, 0], sizes = [1, 1, 8, 32], strides = [1, 1, 1, 1]} : vector<3x4x8x32xf32> to vector<1x1x8x32xf32>
    %87 = vector.shape_cast %86 : vector<1x1x8x32xf32> to vector<8x32xf32>
    %cst_30 = arith.constant dense<0.000000e+00> : vector<8x8xf32>
    %88 = tpu.matmul %87, %1, %cst_30 {dimension_numbers = #tpu.dot_dimension_numbers<[1], [0], [0], [1], [0, 0, 1, 1], [], []>} : vector<8x32xf32>, vector<32x8xf32>, vector<8x8xf32> -> vector<8x8xf32>
    %89 = vector.extract_strided_slice %3 {offsets = [0, 2, 0, 0], sizes = [1, 1, 8, 1], strides = [1, 1, 1, 1]} : vector<3x4x8x1xf32> to vector<1x1x8x1xf32>
    %90 = vector.shape_cast %89 : vector<1x1x8x1xf32> to vector<8x1xf32>
    %91 = vector.broadcast %90 : vector<8x1xf32> to vector<8x8xf32>
    %92 = arith.addf %88, %91 : vector<8x8xf32>
    %93 = vector.extract_strided_slice %2 {offsets = [1, 2, 0, 0], sizes = [1, 1, 8, 32], strides = [1, 1, 1, 1]} : vector<3x4x8x32xf32> to vector<1x1x8x32xf32>
    %94 = vector.shape_cast %93 : vector<1x1x8x32xf32> to vector<8x32xf32>
    %cst_31 = arith.constant dense<0.000000e+00> : vector<8x8xf32>
    %95 = tpu.matmul %94, %1, %cst_31 {dimension_numbers = #tpu.dot_dimension_numbers<[1], [0], [0], [1], [0, 0, 1, 1], [], []>} : vector<8x32xf32>, vector<32x8xf32>, vector<8x8xf32> -> vector<8x8xf32>
    %96 = vector.extract_strided_slice %3 {offsets = [1, 2, 0, 0], sizes = [1, 1, 8, 1], strides = [1, 1, 1, 1]} : vector<3x4x8x1xf32> to vector<1x1x8x1xf32>
    %97 = vector.shape_cast %96 : vector<1x1x8x1xf32> to vector<8x1xf32>
    %98 = vector.broadcast %97 : vector<8x1xf32> to vector<8x8xf32>
    %99 = arith.addf %95, %98 : vector<8x8xf32>
    %100 = vector.extract_strided_slice %2 {offsets = [2, 2, 0, 0], sizes = [1, 1, 8, 32], strides = [1, 1, 1, 1]} : vector<3x4x8x32xf32> to vector<1x1x8x32xf32>
    %101 = vector.shape_cast %100 : vector<1x1x8x32xf32> to vector<8x32xf32>
    %cst_32 = arith.constant dense<0.000000e+00> : vector<8x8xf32>
    %102 = tpu.matmul %101, %1, %cst_32 {dimension_numbers = #tpu.dot_dimension_numbers<[1], [0], [0], [1], [0, 0, 1, 1], [], []>} : vector<8x32xf32>, vector<32x8xf32>, vector<8x8xf32> -> vector<8x8xf32>
    %103 = vector.extract_strided_slice %3 {offsets = [2, 2, 0, 0], sizes = [1, 1, 8, 1], strides = [1, 1, 1, 1]} : vector<3x4x8x1xf32> to vector<1x1x8x1xf32>
    %104 = vector.shape_cast %103 : vector<1x1x8x1xf32> to vector<8x1xf32>
    %105 = vector.broadcast %104 : vector<8x1xf32> to vector<8x8xf32>
    %106 = arith.addf %102, %105 : vector<8x8xf32>
    %107 = tpu.transpose %92, [1, 0] : vector<8x8xf32> -> vector<8x8xf32>
    %cst_33 = arith.constant dense<0.000000e+00> : vector<8x8xf32>
    %108 = tpu.matmul %107, %99, %cst_33 {dimension_numbers = #tpu.dot_dimension_numbers<[1], [0], [0], [1], [0, 0, 1, 1], [], []>} : vector<8x8xf32>, vector<8x8xf32>, vector<8x8xf32> -> vector<8x8xf32>
    %cst_34 = arith.constant dense<0xFF800000> : vector<8xf32>
    %109 = vector.multi_reduction <maximumf>, %108, %cst_34 [1] : vector<8x8xf32> to vector<8xf32>
    %110 = vector.shape_cast %109 : vector<8xf32> to vector<8x1xf32>
    %111 = vector.broadcast %110 : vector<8x1xf32> to vector<8x8xf32>
    %112 = arith.subf %108, %111 : vector<8x8xf32>
    %113 = math.exp %112 : vector<8x8xf32>
    %cst_35 = arith.constant dense<0.000000e+00> : vector<8xf32>
    %114 = vector.multi_reduction <add>, %113, %cst_35 [1] : vector<8x8xf32> to vector<8xf32>
    %115 = vector.shape_cast %114 : vector<8xf32> to vector<8x1xf32>
    %116 = tpu.reciprocal %115 {approx = true} : vector<8x1xf32> -> vector<8x1xf32>
    %117 = vector.broadcast %116 : vector<8x1xf32> to vector<8x8xf32>
    %118 = arith.mulf %113, %117 : vector<8x8xf32>
    %119 = tpu.transpose %118, [1, 0] : vector<8x8xf32> -> vector<8x8xf32>
    %cst_36 = arith.constant dense<0.000000e+00> : vector<8x8xf32>
    %120 = tpu.matmul %106, %119, %cst_36 {dimension_numbers = #tpu.dot_dimension_numbers<[1], [0], [0], [1], [0, 0, 1, 1], [], []>} : vector<8x8xf32>, vector<8x8xf32>, vector<8x8xf32> -> vector<8x8xf32>
    %121 = vector.extract_strided_slice %4 {offsets = [2, 0, 0], sizes = [1, 32, 8], strides = [1, 1, 1]} : vector<4x32x8xf32> to vector<1x32x8xf32>
    %122 = vector.shape_cast %121 : vector<1x32x8xf32> to vector<32x8xf32>
    %cst_37 = arith.constant dense<0.000000e+00> : vector<32x8xf32>
    %123 = tpu.matmul %122, %120, %cst_37 {dimension_numbers = #tpu.dot_dimension_numbers<[1], [0], [0], [1], [0, 0, 1, 1], [], []>} : vector<32x8xf32>, vector<8x8xf32>, vector<32x8xf32> -> vector<32x8xf32>
    %124 = arith.addf %85, %123 : vector<32x8xf32>
    %125 = vector.extract_strided_slice %2 {offsets = [0, 3, 0, 0], sizes = [1, 1, 8, 32], strides = [1, 1, 1, 1]} : vector<3x4x8x32xf32> to vector<1x1x8x32xf32>
    %126 = vector.shape_cast %125 : vector<1x1x8x32xf32> to vector<8x32xf32>
    %cst_38 = arith.constant dense<0.000000e+00> : vector<8x8xf32>
    %127 = tpu.matmul %126, %1, %cst_38 {dimension_numbers = #tpu.dot_dimension_numbers<[1], [0], [0], [1], [0, 0, 1, 1], [], []>} : vector<8x32xf32>, vector<32x8xf32>, vector<8x8xf32> -> vector<8x8xf32>
    %128 = vector.extract_strided_slice %3 {offsets = [0, 3, 0, 0], sizes = [1, 1, 8, 1], strides = [1, 1, 1, 1]} : vector<3x4x8x1xf32> to vector<1x1x8x1xf32>
    %129 = vector.shape_cast %128 : vector<1x1x8x1xf32> to vector<8x1xf32>
    %130 = vector.broadcast %129 : vector<8x1xf32> to vector<8x8xf32>
    %131 = arith.addf %127, %130 : vector<8x8xf32>
    %132 = vector.extract_strided_slice %2 {offsets = [1, 3, 0, 0], sizes = [1, 1, 8, 32], strides = [1, 1, 1, 1]} : vector<3x4x8x32xf32> to vector<1x1x8x32xf32>
    %133 = vector.shape_cast %132 : vector<1x1x8x32xf32> to vector<8x32xf32>
    %cst_39 = arith.constant dense<0.000000e+00> : vector<8x8xf32>
    %134 = tpu.matmul %133, %1, %cst_39 {dimension_numbers = #tpu.dot_dimension_numbers<[1], [0], [0], [1], [0, 0, 1, 1], [], []>} : vector<8x32xf32>, vector<32x8xf32>, vector<8x8xf32> -> vector<8x8xf32>
    %135 = vector.extract_strided_slice %3 {offsets = [1, 3, 0, 0], sizes = [1, 1, 8, 1], strides = [1, 1, 1, 1]} : vector<3x4x8x1xf32> to vector<1x1x8x1xf32>
    %136 = vector.shape_cast %135 : vector<1x1x8x1xf32> to vector<8x1xf32>
    %137 = vector.broadcast %136 : vector<8x1xf32> to vector<8x8xf32>
    %138 = arith.addf %134, %137 : vector<8x8xf32>
    %139 = vector.extract_strided_slice %2 {offsets = [2, 3, 0, 0], sizes = [1, 1, 8, 32], strides = [1, 1, 1, 1]} : vector<3x4x8x32xf32> to vector<1x1x8x32xf32>
    %140 = vector.shape_cast %139 : vector<1x1x8x32xf32> to vector<8x32xf32>
    %cst_40 = arith.constant dense<0.000000e+00> : vector<8x8xf32>
    %141 = tpu.matmul %140, %1, %cst_40 {dimension_numbers = #tpu.dot_dimension_numbers<[1], [0], [0], [1], [0, 0, 1, 1], [], []>} : vector<8x32xf32>, vector<32x8xf32>, vector<8x8xf32> -> vector<8x8xf32>
    %142 = vector.extract_strided_slice %3 {offsets = [2, 3, 0, 0], sizes = [1, 1, 8, 1], strides = [1, 1, 1, 1]} : vector<3x4x8x1xf32> to vector<1x1x8x1xf32>
    %143 = vector.shape_cast %142 : vector<1x1x8x1xf32> to vector<8x1xf32>
    %144 = vector.broadcast %143 : vector<8x1xf32> to vector<8x8xf32>
    %145 = arith.addf %141, %144 : vector<8x8xf32>
    %146 = tpu.transpose %131, [1, 0] : vector<8x8xf32> -> vector<8x8xf32>
    %cst_41 = arith.constant dense<0.000000e+00> : vector<8x8xf32>
    %147 = tpu.matmul %146, %138, %cst_41 {dimension_numbers = #tpu.dot_dimension_numbers<[1], [0], [0], [1], [0, 0, 1, 1], [], []>} : vector<8x8xf32>, vector<8x8xf32>, vector<8x8xf32> -> vector<8x8xf32>
    %cst_42 = arith.constant dense<0xFF800000> : vector<8xf32>
    %148 = vector.multi_reduction <maximumf>, %147, %cst_42 [1] : vector<8x8xf32> to vector<8xf32>
    %149 = vector.shape_cast %148 : vector<8xf32> to vector<8x1xf32>
    %150 = vector.broadcast %149 : vector<8x1xf32> to vector<8x8xf32>
    %151 = arith.subf %147, %150 : vector<8x8xf32>
    %152 = math.exp %151 : vector<8x8xf32>
    %cst_43 = arith.constant dense<0.000000e+00> : vector<8xf32>
    %153 = vector.multi_reduction <add>, %152, %cst_43 [1] : vector<8x8xf32> to vector<8xf32>
    %154 = vector.shape_cast %153 : vector<8xf32> to vector<8x1xf32>
    %155 = tpu.reciprocal %154 {approx = true} : vector<8x1xf32> -> vector<8x1xf32>
    %156 = vector.broadcast %155 : vector<8x1xf32> to vector<8x8xf32>
    %157 = arith.mulf %152, %156 : vector<8x8xf32>
    %158 = tpu.transpose %157, [1, 0] : vector<8x8xf32> -> vector<8x8xf32>
    %cst_44 = arith.constant dense<0.000000e+00> : vector<8x8xf32>
    %159 = tpu.matmul %145, %158, %cst_44 {dimension_numbers = #tpu.dot_dimension_numbers<[1], [0], [0], [1], [0, 0, 1, 1], [], []>} : vector<8x8xf32>, vector<8x8xf32>, vector<8x8xf32> -> vector<8x8xf32>
    %160 = vector.extract_strided_slice %4 {offsets = [3, 0, 0], sizes = [1, 32, 8], strides = [1, 1, 1]} : vector<4x32x8xf32> to vector<1x32x8xf32>
    %161 = vector.shape_cast %160 : vector<1x32x8xf32> to vector<32x8xf32>
    %cst_45 = arith.constant dense<0.000000e+00> : vector<32x8xf32>
    %162 = tpu.matmul %161, %159, %cst_45 {dimension_numbers = #tpu.dot_dimension_numbers<[1], [0], [0], [1], [0, 0, 1, 1], [], []>} : vector<32x8xf32>, vector<8x8xf32>, vector<32x8xf32> -> vector<32x8xf32>
    %163 = arith.addf %124, %162 : vector<32x8xf32>
    %c0_46 = arith.constant 0 : index
    %c0_47 = arith.constant 0 : index
    %c0_48 = arith.constant 0 : index
    %164 = vector.load %arg6[%c0_46, %c0_47, %c0_48] : memref<1x32x8xf32, #tpu.memory_space<vmem>>, vector<1x32x8xf32>
    %165 = vector.shape_cast %164 : vector<1x32x8xf32> to vector<32x8xf32>
    %166 = vector.shape_cast %163 : vector<32x8xf32> to vector<1x32x8xf32>
    tpu.vector_store %arg6[%c0_46, %c0_47, %c0_48], %166 {strides = array<i32>} : memref<1x32x8xf32, #tpu.memory_space<vmem>>, vector<1x32x8xf32>,
    return
  }
  func.func @transform_0(%arg0: i32) -> (i32, i32, i32) {
    %c0_i32 = arith.constant 0 : i32
    %c0_i32_0 = arith.constant 0 : i32
    %c0_i32_1 = arith.constant 0 : i32
    return %arg0, %c0_i32, %c0_i32_0 : i32, i32, i32
  }
  func.func @transform_1(%arg0: i32) -> (i32, i32, i32, i32) {
    %c0_i32 = arith.constant 0 : i32
    %c0_i32_0 = arith.constant 0 : i32
    %c0_i32_1 = arith.constant 0 : i32
    %c0_i32_2 = arith.constant 0 : i32
    %c0_i32_3 = arith.constant 0 : i32
    return %c0_i32, %c0_i32_0, %c0_i32_1, %c0_i32_2 : i32, i32, i32, i32
  }
  func.func @transform_2(%arg0: i32) -> (i32, i32, i32, i32) {
    %c0_i32 = arith.constant 0 : i32
    %c0_i32_0 = arith.constant 0 : i32
    %c0_i32_1 = arith.constant 0 : i32
    %c0_i32_2 = arith.constant 0 : i32
    %c0_i32_3 = arith.constant 0 : i32
    return %c0_i32, %c0_i32_0, %c0_i32_1, %c0_i32_2 : i32, i32, i32, i32
  }
  func.func @transform_3(%arg0: i32) -> (i32, i32, i32) {
    %c0_i32 = arith.constant 0 : i32
    %c0_i32_0 = arith.constant 0 : i32
    %c0_i32_1 = arith.constant 0 : i32
    %c0_i32_2 = arith.constant 0 : i32
    return %c0_i32, %c0_i32_0, %c0_i32_1 : i32, i32, i32
  }
  func.func @transform_4(%arg0: i32) -> (i32, i32) {
    %c0_i32 = arith.constant 0 : i32
    %c0_i32_0 = arith.constant 0 : i32
    %c0_i32_1 = arith.constant 0 : i32
    return %c0_i32, %c0_i32_0 : i32, i32
  }
  func.func @transform_5(%arg0: i32) -> (i32, i32, i32) {
    %c0_i32 = arith.constant 0 : i32
    %c0_i32_0 = arith.constant 0 : i32
    %c0_i32_1 = arith.constant 0 : i32
    return %arg0, %c0_i32, %c0_i32_0 : i32, i32, i32
  }
}

</mosaic_0001>

<bundles_post_ra>
// kernel: tpu_custom_call.1
= control target key start
LH: loop header
LB: loop body
LE: loop exit
PB: predicated region body
PF: predicated region fallthrough
CT: control target
= control target key end

     0   :  { %s2979_s18 = smov 0   ;;  %s3303_s0 = inlined_call_operand.vmem [shape: f32[2,32,8], index: 0, kind: input, shape index: {}]   ;;  %s3304_s1 = inlined_call_operand.vmem [shape: f32[3,4,8,32], index: 1, kind: input, shape index: {}]   ;;  %s3305_s2 = inlined_call_operand.vmem [shape: f32[3,4,8,1], index: 2, kind: input, shape index: {}]   ;;  %s3306_s3 = inlined_call_operand.vmem [shape: f32[4,32,8], index: 3, kind: input, shape index: {}]   ;;  %s3307_s4 = inlined_call_operand.vmem [shape: f32[32,1], index: 4, kind: input, shape index: {}]   ;;  %s3308_s5 = inlined_call_operand.vmem [shape: f32[2,32,8], index: 5, kind: output, shape index: {}]  }
   0x1 LB: > { %s2466_s19 = sadd.s32 4294967295, %s2943_s18   ;;  %p2470_p0 = scmp.ge.s32.totalorder %s2943_s18, 1  ;;  %s2943_s18 = sphi %s2979_s18, %s15_s18  }
   0x2   : > { %p187_p1 = scmp.lt.s32.totalorder %s2943_s18, 3 }
   0x4   : > { %p188_p2 = pnand %p2470_p0, %p187_p1 }
   0x5   : > { %p215_p3 = scmp.lt.s32.totalorder (!%p188_p2), %s2466_s19, 1  ;;  %v2945_v0 = vmov (!%p188_p2), 0.0|0.0   ;;  %vm2946_vm0 = vmmov (!%p188_p2), 0   ;;  %v2947_v1 = vmov (!%p188_p2), 0.0   ;;  %v241_v2 = vld [vmem:[%s3305_s2] sm:$0xff] (!%p188_p2)  ;;  %v2948_v3 = vmov (!%p188_p2), 0  }
   0x6   : > { %191 = sbr.rel (%p188_p2) target bundleno = 4230 (0x1086), region = 40  ;;  %2819 = vmatprep.subr.bf16.mxu1 (!%p188_p2), %v2945_v0  ;;  %2623 = vmatprep.mubr.msk.f32.mxu1 (!%p188_p2), %vm2946_vm0, %v2947_v1  ;;  %v245_v4 = vld [vmem:[%s3305_s2 + $0x20] sm:$0xff] (!%p188_p2)  ;;  %vm302_vm1 = vcmask (!%p188_p2), 261120   ;;  %vm564_vm2 = vcmask (!%p188_p2), 64512   ;;  %v242_v34 = vld [vmem:[%s3305_s2 + $0x8] sm:$0xff] (!%p188_p2)  ;;  %v255_v46 = vld [vmem:[%s3306_s3 + $0x10] sm:$0xff] (!%p188_p2) }
   0x7   : > { %2919 = vset.pattern.permute.xlu0 (!%p188_p2), %v2948_v3  ;;  %2831 = vmatprep.subr.bf16.mxu0 (!%p188_p2), %v2945_v0  ;;  %v229_v11 = vld [vmem:[%s3304_s1] sm:$0xff] (!%p188_p2)  ;;  %v246_v35 = vld [vmem:[%s3305_s2 + $0x28] sm:$0xff] (!%p188_p2)  ;;  %v256_v47 = vld [vmem:[%s3306_s3 + $0x18] sm:$0xff] (!%p188_p2) }
   0x8   : > { %299 = vperm.xlu0 (!%p188_p2), %2919, %v241_v2   ;;  %2645 = vmatprep.mubr.msk.f32.mxu0 (!%p188_p2), %vm2946_vm0, %v2947_v1  ;;  %v233_v12 = vld [vmem:[%s3304_s1 + $0x20] sm:$0xff] (!%p188_p2)  ;;  %v230_v41 = vld [vmem:[%s3304_s1 + $0x8] sm:$0xff] (!%p188_p2)  ;;  %v231_v54 = vld [vmem:[%s3304_s1 + $0x10] sm:$0xff] (!%p188_p2) }
   0x9   : > { %v237_v22 = vld [vmem:[%s3304_s1 + $0x40] sm:$0xff] (!%p188_p2)  ;;  %v254_v44 = vld [vmem:[%s3306_s3 + $0x8] sm:$0xff] (!%p188_p2) }
   0xa   : > { %v249_v31 = vld [vmem:[%s3305_s2 + $0x40] sm:$0xff] (!%p188_p2)  ;;  %v234_v48 = vld [vmem:[%s3304_s1 + $0x28] sm:$0xff] (!%p188_p2) }
   0xb   : > { %v253_v42 = vld [vmem:[%s3306_s3] sm:$0xff] (!%p188_p2)  ;;  %v238_v53 = vld [vmem:[%s3304_s1 + $0x48] sm:$0xff] (!%p188_p2) }
   0xc   : > { %378 = vperm.xlu0 (!%p188_p2), %2919, %v245_v4   ;;  %v250_v63 = vld [vmem:[%s3305_s2 + $0x48] sm:$0xff] (!%p188_p2) }
   0xd   : > { %s3310_s19 = smov (!%p215_p3, %s2466_s19), 1 }
   0xe   : > { %s2517_s22 = sshll.u32 %s3310_s19, 5 }
   0xf   : > { %s219_s27 = scalar_lea.vmem %s3303_s0, %s2517_s22  ;;  %s224_s26 = scalar_lea.vmem %s3308_s5, %s2517_s22 }
  0x10   : > { %v3007_v5 = vld [vmem:[%s219_s27] sm:$0xff]  ;;  %v3009_v6 = vld [vmem:[%s219_s27 + $0x8] sm:$0xff]  ;;  %v3011_v7 = vld [vmem:[%s219_s27 + $0x10] sm:$0xff] }
  0x11   : > { %v3015_v8 = vpack.c.bf16 %v3009_v6, %v3007_v5  ;;  %v3017_v9 = vld [vmem:[%s219_s27 + $0x18] sm:$0xff] }
  0x12   : > { %v3022_v10 = vpack.c.bf16 %v3017_v9, %v3011_v7 }
  0x13   : > { %2821 = vmatpush3.bf16.msra.mxu1 %v3015_v8  ;;  %2833 = vmatpush3.bf16.msra.mxu0 %v3015_v8 }
  0x14   : > { %2822 = vmatprep.subr.bf16.mxu1 %v2945_v0  ;;  %2834 = vmatprep.subr.bf16.mxu0 %v2945_v0 }
  0x17   : > { %2824 = vmatpush3.bf16.msra.mxu1 %v3022_v10  ;;  %2836 = vmatpush3.bf16.msra.mxu0 %v3022_v10 }
  0x18   : > { %2825 = vmatprep.subr.bf16.mxu1 %v2945_v0 }
  0x1a   : > { %2624 = vmatmul.mubr.msk.f32.vlgmr.msra.gmra.mrb[0].mxu1 %vm302_vm1, %v229_v11  ;;  %2646 = vmatmul.mubr.msk.f32.vlgmr.msra.gmra.mrb[0].mxu0 %vm302_vm1, %v237_v22 }
  0x1b   : > { %2827 = vmatpush3.bf16.msra.mxu1 %v3015_v8  ;;  %2634 = vmatprep.mubr.msk.f32.mxu1 %vm2946_vm0, %v2947_v1 }
  0x1c   : > { %2828 = vmatprep.subr.bf16.mxu1 %v2945_v0  ;;  %2660 = vmatprep.mubr.msk.f32.mxu0 %vm564_vm2, %v253_v42 }
  0x1f   : > { %2830 = vmatpush3.bf16.msra.mxu1 %v3022_v10 }
  0x20   : > { %2648 = vmatprep.subr.mxu1 %v2947_v1 }
  0x22   : > { %2635 = vmatmul.mubr.msk.f32.vlgmr.msra.gmra.mrb[2].mxu1 %vm302_vm1, %v233_v12  ;;  %v247_v12 = vld [vmem:[%s3305_s2 + $0x30] sm:$0xff] }
  0x23   : > { %2650 = vmatprep.mubr.msk.f32.mxu1 %vm2946_vm0, %v2947_v1 }
  0x87   : > { %v300_v13 = vpop.permute.xlu0 %299 }
  0x8b   : > { %v379_v17 = vpop.permute.xlu0 %378 }
  0xed   : > { %v372_v14 = vpop.f32.mrb[0].mxu1  ;;  %v528_v32 = vpop.f32.mrb[0].mxu0 }
  0xee   : > { %v2625_v15 = vpop.f32.mrb[1].mxu1  ;;  %v373_v16 = vadd.f32 %v372_v14, %v300_v13  ;;  %v2647_v33 = vpop.f32.mrb[1].mxu0 }
  0xef   : > { %v235_v33 = vld [vmem:[%s3304_s1 + $0x30] sm:$0xff] }
  0xf0   : > { %532 = vxpose.xlu1.b32.start.end [1/1] (short) (narrow) %v373_v16, 8 }
  0xf5   : > { %v450_v18 = vpop.f32.mrb[2].mxu1 }
  0xf6   : > { %v451_v19 = vadd.f32 %v450_v18, %v379_v17  ;;  %v2636_v20 = vpop.f32.mrb[3].mxu1 }
  0xf8   : > { %2649 = vmatpush3.msra.mxu1 %v451_v19 }
  0xf9   : > { %2653 = vmatprep.subr.mxu1 %v2947_v1 }
 0x10e   : > { %2920 = vset.pattern.permute.xlu1 %v2948_v3  ;;  %v243_v3 = vld [vmem:[%s3305_s2 + $0x10] sm:$0xff] }
 0x170   : > { %v548_v21 = vpop.trf.xlu1 }
 0x171   : > { %2651 = vmatmul.mubr.msk.f32.vlgmr.msra.gmra.mrb[4].mxu1 %vm564_vm2, %v548_v21 }
 0x172   : > { %2655 = vmatprep.mubr.msk.f32.mxu1 %vm2946_vm0, %v2947_v1 }
 0x244   : > { %v634_v23 = vpop.f32.mrb[4].mxu1 }
 0x245   : > { %v2652_v24 = vpop.f32.mrb[5].mxu1  ;;  %v638_v25 = vsel %vm564_vm2, %v634_v23, -inf }
 0x246   : > { %639 = vmax.xlane.f32.xlu1 %v638_v25 }
 0x257   : > { %828 = vperm.xlu1 %2920, %v242_v34  }
 0x25b   : > { %906 = vperm.xlu1 %2920, %v246_v35  }
 0x2d3   : > { %v640_v26 = vpop.xlane.xlu1 %639 }
 0x2d4   : > { %v641_v27 = vsub.f32 %v634_v23, %v640_v26  ;;  %v248_v23 = vld [vmem:[%s3305_s2 + $0x38] sm:$0xff] }
 0x2d6   : > { %v642_v28 = vmul.f32 1.442695, %v641_v27  ;;  %v257_v27 = vld [vmem:[%s3306_s3 + $0x20] sm:$0xff] }
 0x2d7   : > { %v829_v49 = vpop.permute.xlu1 %828 }
 0x2d8   : > { %2921 = vpow2.f32 %v642_v28 }
 0x2db   : > { %v907_v55 = vpop.permute.xlu1 %906 }
 0x2e2   : > { %v2922_v29 = vpop.eup %2921 }
 0x2e3   : > { %v644_v30 = vsel %vm564_vm2, %v2922_v29, 0.0 }
 0x2e4   : > { %645 = vadd.xlane.f32.xlu0 %v644_v30 }
 0x2fa   : > { %456 = vperm.xlu0 %2919, %v249_v31   ;;  %v259_v31 = vld [vmem:[%s3306_s3 + $0x30] sm:$0xff] }
 0x371   : > { %v646_v36 = vpop.xlane.xlu0 %645 }
 0x372   : > { %2923 = vrcp.f32 %v646_v36 }
 0x379   : > { %v457_v39 = vpop.permute.xlu0 %456 }
 0x37a   : > { %v529_v40 = vadd.f32 %v528_v32, %v457_v39  ;;  %v260_v32 = vld [vmem:[%s3306_s3 + $0x38] sm:$0xff]  ;;  %v239_v39 = vld [vmem:[%s3304_s1 + $0x50] sm:$0xff] }
 0x37c   : > { %v2924_v37 = vpop.eup %2923 }
 0x37d   : > { %v648_v38 = vmul.f32 %v2924_v37, %v2922_v29  ;;  %v258_v29 = vld [vmem:[%s3306_s3 + $0x28] sm:$0xff] }
 0x37f   : > { %2654 = vmatpush3.xpose.msk.msra.mxu1 %vm564_vm2, %v648_v38 }
 0x380   : > { %2837 = vmatprep.subr.bf16.mxu1 %v2945_v0 }
 0x382   : > { %2656 = vmatmul.mubr.msk.f32.vlgmr.msra.gmra.mrb[6].mxu1 %vm564_vm2, %v529_v40 }
 0x383   : > { %2839 = vmatpush3.bf16.msra.mxu1 %v3015_v8  ;;  %2674 = vmatprep.mubr.msk.f32.mxu1 %vm2946_vm0, %v2947_v1 }
 0x384   : > { %2840 = vmatprep.subr.bf16.mxu1 %v2945_v0 }
 0x387   : > { %2842 = vmatpush3.bf16.msra.mxu1 %v3022_v10 }
 0x388   : > { %2849 = vmatprep.subr.bf16.mxu1 %v2945_v0 }
 0x38a   : > { %2675 = vmatmul.mubr.msk.f32.vlgmr.msra.gmra.mrb[8].mxu1 %vm302_vm1, %v230_v41 }
 0x38b   : > { %2851 = vmatpush3.bf16.msra.mxu1 %v3015_v8  ;;  %2696 = vmatprep.mubr.msk.f32.mxu1 %vm2946_vm0, %v2947_v1 }
 0x38c   : > { %2852 = vmatprep.subr.bf16.mxu1 %v2945_v0 }
 0x38f   : > { %2854 = vmatpush3.bf16.msra.mxu1 %v3022_v10 }
 0x390   : > { %2855 = vmatprep.subr.bf16.mxu1 %v2945_v0 }
 0x392   : > { %2697 = vmatmul.mubr.msk.f32.vlgmr.msra.gmra.mrb[10].mxu1 %vm302_vm1, %v238_v53 }
 0x393   : > { %2857 = vmatpush3.bf16.msra.mxu1 %v3015_v8  ;;  %2725 = vmatprep.mubr.msk.f32.mxu1 %vm2946_vm0, %v2947_v1 }
 0x394   : > { %2858 = vmatprep.subr.bf16.mxu1 %v2945_v0 }
 0x397   : > { %2860 = vmatpush3.bf16.msra.mxu1 %v3022_v10 }
 0x398   : > { %2867 = vmatprep.subr.bf16.mxu1 %v2945_v0 }
 0x39a   : > { %2726 = vmatmul.mubr.msk.f32.vlgmr.msra.gmra.mrb[12].mxu1 %vm302_vm1, %v231_v54 }
 0x39b   : > { %2869 = vmatpush3.bf16.msra.mxu1 %v3015_v8  ;;  %2747 = vmatprep.mubr.msk.f32.mxu1 %vm2946_vm0, %v2947_v1 }
 0x39c   : > { %2870 = vmatprep.subr.bf16.mxu1 %v2945_v0 }
 0x39f   : > { %2872 = vmatpush3.bf16.msra.mxu1 %v3022_v10 }
 0x3a0   : > { %2755 = vmatprep.subr.mxu1 %v2947_v1 }
 0x3a2   : > { %2748 = vmatmul.mubr.msk.f32.vlgmr.msra.gmra.mrb[14].mxu1 %vm302_vm1, %v239_v39  ;;  %v267_v39 = vld [vmem:[%s3306_s3 + $0x70] sm:$0xff] }
 0x3a3   : > { %2757 = vmatprep.mubr.msk.f32.mxu1 %vm2946_vm0, %v2947_v1 }
 0x455   : > { %v721_v43 = vpop.f32.mrb[6].mxu1 }
 0x456   : > { %v2657_v45 = vpop.f32.mrb[7].mxu1  ;;  %2658 = vmatprep.subr.mxu0 %v721_v43 }
 0x457   : > { %2659 = vmatpush3.msra.mxu0 %v721_v43 }
 0x458   : > { %2661 = vmatmul.mubr.msk.f32.vlgmr.msra.gmra.mrb[2].mxu0 %vm564_vm2, %v254_v44  ;;  %2843 = vmatprep.subr.bf16.mxu0 %v2945_v0 }
 0x459   : > { %2845 = vmatpush3.bf16.msra.mxu0 %v3015_v8  ;;  %2663 = vmatprep.mubr.msk.f32.mxu0 %vm564_vm2, %v255_v46 }
 0x45a   : > { %2846 = vmatprep.subr.bf16.mxu0 %v2945_v0 }
 0x45c   : > { %2664 = vmatmul.mubr.msk.f32.gmra.mrb[4].mxu0 %vm564_vm2, %v256_v47 }
 0x45d   : > { %2848 = vmatpush3.bf16.msra.mxu0 %v3022_v10  ;;  %2685 = vmatprep.mubr.msk.f32.mxu0 %vm2946_vm0, %v2947_v1  ;;  %v900_v50 = vpop.f32.mrb[8].mxu1 }
 0x45e   : > { %v901_v51 = vadd.f32 %v900_v50, %v829_v49  ;;  %v2676_v52 = vpop.f32.mrb[9].mxu1  ;;  %2699 = vmatprep.subr.mxu0 %v2947_v1 }
 0x460   : > { %2686 = vmatmul.mubr.msk.f32.vlgmr.msra.gmra.mrb[6].mxu0 %vm302_vm1, %v234_v48  ;;  %1060 = vxpose.xlu0.b32.start.end [1/1] (short) (narrow) %v901_v51, 8  ;;  %v251_v48 = vld [vmem:[%s3305_s2 + $0x50] sm:$0xff]  ;;  %v244_v51 = vld [vmem:[%s3305_s2 + $0x18] sm:$0xff] }
 0x461   : > { %2701 = vmatprep.mubr.msk.f32.mxu0 %vm2946_vm0, %v2947_v1 }
 0x465   : > { %v1056_v2 = vpop.f32.mrb[10].mxu1 }
 0x466   : > { %v2698_v4 = vpop.f32.mrb[11].mxu1 }
 0x46d   : > { %v1427_v11 = vpop.f32.mrb[12].mxu1 }
 0x46e   : > { %v2727_v13 = vpop.f32.mrb[13].mxu1 }
 0x475   : > { %v1583_v49 = vpop.f32.mrb[14].mxu1 }
 0x476   : > { %v2749_v50 = vpop.f32.mrb[15].mxu1 }
 0x4e0   : > { %v1076_v59 = vpop.trf.xlu0 }
 0x533   : > { %v978_v56 = vpop.f32.mrb[6].mxu0 }
 0x534   : > { %v979_v57 = vadd.f32 %v978_v56, %v907_v55  ;;  %v2687_v58 = vpop.f32.mrb[7].mxu0 }
 0x535   : > { %v261_v58 = vld [vmem:[%s3306_s3 + $0x40] sm:$0xff] }
 0x536   : > { %2700 = vmatpush3.msra.mxu0 %v979_v57  ;;  %v232_v57 = vld [vmem:[%s3304_s1 + $0x18] sm:$0xff] }
 0x537   : > { %2702 = vmatmul.mubr.msk.f32.vlgmr.msra.gmra.mrb[8].mxu0 %vm564_vm2, %v1076_v59  ;;  %2704 = vmatprep.subr.mxu0 %v2947_v1 }
 0x538   : > { %2706 = vmatprep.mubr.msk.f32.mxu0 %vm2946_vm0, %v2947_v1 }
 0x60a   : > { %v1161_v60 = vpop.f32.mrb[8].mxu0 }
 0x60b   : > { %v2703_v61 = vpop.f32.mrb[9].mxu0  ;;  %v1165_v62 = vsel %vm564_vm2, %v1161_v60, -inf }
 0x60c   : > { %1166 = vmax.xlane.f32.xlu1 %v1165_v62  ;;  %v263_v62 = vld [vmem:[%s3306_s3 + $0x50] sm:$0xff] }
 0x61d   : > { %984 = vperm.xlu1 %2920, %v250_v63   ;;  %v264_v63 = vld [vmem:[%s3306_s3 + $0x58] sm:$0xff] }
 0x621   : > { %1355 = vperm.xlu1 %2920, %v243_v3  }
 0x625   : > { %1433 = vperm.xlu1 %2920, %v247_v12  }
 0x699   : > { %v1167_v14 = vpop.xlane.xlu1 %1166 }
 0x69a   : > { %v1168_v15 = vsub.f32 %v1161_v60, %v1167_v14  ;;  %v262_v60 = vld [vmem:[%s3306_s3 + $0x48] sm:$0xff] }
 0x69c   : > { %v1169_v16 = vmul.f32 1.442695, %v1168_v15 }
 0x69d   : > { %v985_v17 = vpop.permute.xlu1 %984 }
 0x69e   : > { %2925 = vpow2.f32 %v1169_v16  ;;  %v1057_v18 = vadd.f32 %v1056_v2, %v985_v17 }
 0x6a1   : > { %v1356_v19 = vpop.permute.xlu1 %1355 }
 0x6a2   : > { %v1428_v20 = vadd.f32 %v1427_v11, %v1356_v19  ;;  %v252_v19 = vld [vmem:[%s3305_s2 + $0x58] sm:$0xff] }
 0x6a4   : > { %1587 = vxpose.xlu1.b32.start.end [1/1] (short) (narrow) %v1428_v20, 8 }
 0x6a5   : > { %v1434_v34 = vpop.permute.xlu1 %1433 }
 0x6a8   : > { %v2926_v21 = vpop.eup %2925 }
 0x6a9   : > { %v1171_v22 = vsel %vm564_vm2, %v2926_v21, 0.0 }
 0x6aa   : > { %1172 = vadd.xlane.f32.xlu0 %v1171_v22 }
 0x6c2   : > { %1960 = vperm.xlu1 %2920, %v248_v23   ;;  %v272_v23 = vld [vmem:[%s3307_s4 + $0x18] sm:$0xff] }
 0x724   : > { %v1603_v38 = vpop.trf.xlu1 }
 0x737   : > { %v1173_v24 = vpop.xlane.xlu0 %1172 }
 0x738   : > { %2927 = vrcp.f32 %v1173_v24 }
 0x742   : > { %v2928_v25 = vpop.eup %2927 }
 0x743   : > { %v1175_v26 = vmul.f32 %v2928_v25, %v2926_v21  ;;  %v270_v21 = vld [vmem:[%s3307_s4 + $0x8] sm:$0xff] }
 0x745   : > { %2705 = vmatpush3.xpose.msk.msra.mxu0 %vm564_vm2, %v1175_v26 }
 0x748   : > { %2707 = vmatmul.mubr.msk.f32.vlgmr.msra.gmra.mrb[10].mxu0 %vm564_vm2, %v1057_v18 }
 0x749   : > { %2711 = vmatprep.mubr.msk.f32.mxu0 %vm564_vm2, %v257_v27 }
 0x81b   : > { %v1248_v28 = vpop.f32.mrb[10].mxu0 }
 0x81c   : > { %v2708_v30 = vpop.f32.mrb[11].mxu0  ;;  %2709 = vmatprep.subr.mxu0 %v1248_v28 }
 0x81d   : > { %2710 = vmatpush3.msra.mxu0 %v1248_v28 }
 0x81e   : > { %2712 = vmatmul.mubr.msk.f32.vlgmr.msra.gmra.mrb[2].mxu0 %vm564_vm2, %v258_v29  ;;  %2861 = vmatprep.subr.bf16.mxu0 %v2945_v0  ;;  %v269_v29 = vld [vmem:[%s3307_s4] sm:$0xff] }
 0x81f   : > { %2863 = vmatpush3.bf16.msra.mxu0 %v3015_v8  ;;  %2714 = vmatprep.mubr.msk.f32.mxu0 %vm564_vm2, %v259_v31 }
 0x820   : > { %2864 = vmatprep.subr.bf16.mxu0 %v2945_v0 }
 0x822   : > { %2715 = vmatmul.mubr.msk.f32.gmra.mrb[4].mxu0 %vm564_vm2, %v260_v32 }
 0x823   : > { %2866 = vmatpush3.bf16.msra.mxu0 %v3022_v10  ;;  %2736 = vmatprep.mubr.msk.f32.mxu0 %vm2946_vm0, %v2947_v1 }
 0x824   : > { %2750 = vmatprep.subr.mxu0 %v2947_v1 }
 0x826   : > { %2737 = vmatmul.mubr.msk.f32.vlgmr.msra.gmra.mrb[12].mxu0 %vm302_vm1, %v235_v33 }
 0x827   : > { %2752 = vmatprep.mubr.msk.f32.mxu0 %vm2946_vm0, %v2947_v1 }
 0x8f9   : > { %v1505_v35 = vpop.f32.mrb[12].mxu0 }
 0x8fa   : > { %v1506_v36 = vadd.f32 %v1505_v35, %v1434_v34  ;;  %v2738_v37 = vpop.f32.mrb[13].mxu0  ;;  %v265_v35 = vld [vmem:[%s3306_s3 + $0x60] sm:$0xff] }
 0x8fb   : > { %v266_v37 = vld [vmem:[%s3306_s3 + $0x68] sm:$0xff] }
 0x8fc   : > { %2751 = vmatpush3.msra.mxu0 %v1506_v36 }
 0x8fd   : > { %2753 = vmatmul.mubr.msk.f32.vlgmr.msra.gmra.mrb[14].mxu0 %vm564_vm2, %v1603_v38 }
 0x8fe   : > { %2762 = vmatprep.mubr.msk.f32.mxu0 %vm564_vm2, %v261_v58 }
 0x9d0   : > { %v1688_v40 = vpop.f32.mrb[14].mxu0 }
 0x9d1   : > { %v2754_v41 = vpop.f32.mrb[15].mxu0  ;;  %v1692_v42 = vsel %vm564_vm2, %v1688_v40, -inf }
 0x9d2   : > { %1693 = vmax.xlane.f32.xlu0 %v1692_v42 }
 0xa5f   : > { %v1694_v43 = vpop.xlane.xlu0 %1693 }
 0xa60   : > { %v1695_v44 = vsub.f32 %v1688_v40, %v1694_v43  ;;  %v268_v40 = vld [vmem:[%s3306_s3 + $0x78] sm:$0xff] }
 0xa62   : > { %v1696_v45 = vmul.f32 1.442695, %v1695_v44 }
 0xa64   : > { %2929 = vpow2.f32 %v1696_v45 }
 0xa6e   : > { %v2930_v46 = vpop.eup %2929 }
 0xa6f   : > { %v1698_v47 = vsel %vm564_vm2, %v2930_v46, 0.0 }
 0xa70   : > { %1699 = vadd.xlane.f32.xlu0 %v1698_v47 }
 0xa86   : > { %1511 = vperm.xlu0 %2919, %v251_v48  }
 0xa8a   : > { %1882 = vperm.xlu0 %2919, %v244_v51  }
 0xafd   : > { %v1700_v52 = vpop.xlane.xlu0 %1699 }
 0xafe   : > { %2931 = vrcp.f32 %v1700_v52 }
 0xb05   : > { %v1512_v55 = vpop.permute.xlu0 %1511 }
 0xb06   : > { %v1584_v56 = vadd.f32 %v1583_v49, %v1512_v55 }
 0xb08   : > { %v2932_v53 = vpop.eup %2931 }
 0xb09   : > { %v1702_v54 = vmul.f32 %v2932_v53, %v2930_v46  ;;  %v1883_v2 = vpop.permute.xlu0 %1882 }
 0xb0b   : > { %2756 = vmatpush3.xpose.msk.msra.mxu1 %vm564_vm2, %v1702_v54 }
 0xb0c   : > { %2873 = vmatprep.subr.bf16.mxu1 %v2945_v0 }
 0xb0e   : > { %2758 = vmatmul.mubr.msk.f32.vlgmr.msra.gmra.mrb[16].mxu1 %vm564_vm2, %v1584_v56 }
 0xb0f   : > { %2875 = vmatpush3.bf16.msra.mxu1 %v3015_v8  ;;  %2776 = vmatprep.mubr.msk.f32.mxu1 %vm2946_vm0, %v2947_v1 }
 0xb10   : > { %2876 = vmatprep.subr.bf16.mxu1 %v2945_v0 }
 0xb13   : > { %2878 = vmatpush3.bf16.msra.mxu1 %v3022_v10 }
 0xb14   : > { %2885 = vmatprep.subr.bf16.mxu1 %v2945_v0 }
 0xb16   : > { %2777 = vmatmul.mubr.msk.f32.vlgmr.msra.gmra.mrb[18].mxu1 %vm302_vm1, %v232_v57 }
 0xb17   : > { %2887 = vmatpush3.bf16.msra.mxu1 %v3015_v8  ;;  %2798 = vmatprep.mubr.msk.f32.mxu1 %vm2946_vm0, %v2947_v1 }
 0xb18   : > { %2888 = vmatprep.subr.bf16.mxu1 %v2945_v0 }
 0xb1b   : > { %2890 = vmatpush3.bf16.msra.mxu1 %v3022_v10 }
 0xbe1   : > { %v1775_v59 = vpop.f32.mrb[16].mxu1 }
 0xbe2   : > { %v2759_v61 = vpop.f32.mrb[17].mxu1  ;;  %2760 = vmatprep.subr.mxu0 %v1775_v59 }
 0xbe3   : > { %2761 = vmatpush3.msra.mxu0 %v1775_v59 }
 0xbe4   : > { %2763 = vmatmul.mubr.msk.f32.vlgmr.msra.gmra.mrb[2].mxu0 %vm564_vm2, %v262_v60  ;;  %2879 = vmatprep.subr.bf16.mxu0 %v2945_v0 }
 0xbe5   : > { %2881 = vmatpush3.bf16.msra.mxu0 %v3015_v8  ;;  %2765 = vmatprep.mubr.msk.f32.mxu0 %vm564_vm2, %v263_v62  ;;  %v236_v8 = vld [vmem:[%s3304_s1 + $0x38] sm:$0xff] }
 0xbe6   : > { %2882 = vmatprep.subr.bf16.mxu0 %v2945_v0  ;;  %v240_v0 = vld [vmem:[%s3304_s1 + $0x58] sm:$0xff] }
 0xbe7   : > { %2799 = vmatmul.mubr.msk.f32.vlgmr.msra.gmra.mrb[20].mxu1 %vm302_vm1, %v240_v0 }
 0xbe8   : > { %2766 = vmatmul.mubr.msk.f32.gmra.mrb[4].mxu0 %vm564_vm2, %v264_v63 }
 0xbe9   : > { %v1954_v3 = vpop.f32.mrb[18].mxu1  ;;  %2884 = vmatpush3.bf16.msra.mxu0 %v3022_v10  ;;  %2787 = vmatprep.mubr.msk.f32.mxu0 %vm2946_vm0, %v2947_v1  ;;  %v1961_v10 = vpop.permute.xlu1 %1960 }
 0xbea   : > { %v1955_v4 = vadd.f32 %v1954_v3, %v1883_v2  ;;  %v2778_v11 = vpop.f32.mrb[19].mxu1  ;;  %2801 = vmatprep.subr.mxu0 %v2947_v1 }
 0xbec   : > { %2788 = vmatmul.mubr.msk.f32.vlgmr.msra.gmra.mrb[16].mxu0 %vm302_vm1, %v236_v8  ;;  %2114 = vxpose.xlu0.b32.start.end [1/1] (short) (narrow) %v1955_v4, 8 }
 0xbed   : > { %2803 = vmatprep.mubr.msk.f32.mxu0 %vm2946_vm0, %v2947_v1 }
 0xc6c   : > { %v2130_v15 = vpop.trf.xlu0 }
 0xcba   : > { %v2110_v20 = vpop.f32.mrb[20].mxu1 }
 0xcbb   : > { %v2800_v22 = vpop.f32.mrb[21].mxu1 }
 0xcbf   : > { %v2032_v12 = vpop.f32.mrb[16].mxu0 }
 0xcc0   : > { %v2033_v13 = vadd.f32 %v2032_v12, %v1961_v10  ;;  %v2789_v14 = vpop.f32.mrb[17].mxu0 }
 0xcc2   : > { %2802 = vmatpush3.msra.mxu0 %v2033_v13 }
 0xcc3   : > { %2804 = vmatmul.mubr.msk.f32.vlgmr.msra.gmra.mrb[18].mxu0 %vm564_vm2, %v2130_v15  ;;  %2806 = vmatprep.subr.mxu0 %v2947_v1 }
 0xcc4   : > { %2808 = vmatprep.mubr.msk.f32.mxu0 %vm2946_vm0, %v2947_v1  ;;  %v271_v1 = vld [vmem:[%s3307_s4 + $0x10] sm:$0xff] }
 0xd96   : > { %v2215_v16 = vpop.f32.mrb[18].mxu0 }
 0xd97   : > { %v2805_v17 = vpop.f32.mrb[19].mxu0  ;;  %v2219_v18 = vsel %vm564_vm2, %v2215_v16, -inf }
 0xd98   : > { %2220 = vmax.xlane.f32.xlu1 %v2219_v18 }
 0xda9   : > { %2038 = vperm.xlu1 %2920, %v252_v19  }
 0xdad   : > { %280 = vperm.xlu1 %2920, %v270_v21  }
 0xdb1   : > { %285 = vperm.xlu1 %2920, %v271_v1  }
 0xdb5   : > { %290 = vperm.xlu1 %2920, %v272_v23  }
 0xe25   : > { %v2221_v24 = vpop.xlane.xlu1 %2220 }
 0xe26   : > { %v2222_v25 = vsub.f32 %v2215_v16, %v2221_v24 }
 0xe28   : > { %v2223_v26 = vmul.f32 1.442695, %v2222_v25 }
 0xe29   : > { %v2039_v32 = vpop.permute.xlu1 %2038 }
 0xe2a   : > { %2933 = vpow2.f32 %v2223_v26  ;;  %v2111_v34 = vadd.f32 %v2110_v20, %v2039_v32 }
 0xe2d   : > { %v281_v41 = vpop.permute.xlu1 %280 }
 0xe2e   : > { %v294_v44 = vadd.f32 %v281_v41, %v3009_v6 }
 0xe31   : > { %v286_v42 = vpop.permute.xlu1 %285 }
 0xe32   : > { %v295_v52 = vadd.f32 %v286_v42, %v3011_v7 }
 0xe34   : > { %v2934_v27 = vpop.eup %2933 }
 0xe35   : > { %v2225_v28 = vsel %vm564_vm2, %v2934_v27, 0.0  ;;  %v291_v45 = vpop.permute.xlu1 %290 }
 0xe36   : > { %2226 = vadd.xlane.f32.xlu0 %v2225_v28  ;;  %v296_v51 = vadd.f32 %v291_v45, %v3017_v9 }
 0xe4c   : > { %275 = vperm.xlu0 %2919, %v269_v29  }
 0xec3   : > { %v2227_v30 = vpop.xlane.xlu0 %2226 }
 0xec4   : > { %2935 = vrcp.f32 %v2227_v30 }
 0xecb   : > { %v276_v43 = vpop.permute.xlu0 %275 }
 0xecc   : > { %v293_v46 = vadd.f32 %v276_v43, %v3007_v5 }
 0xece   : > { %v2936_v31 = vpop.eup %2935 }
 0xecf   : > { %v2229_v33 = vmul.f32 %v2936_v31, %v2934_v27 }
 0xed1   : > { %2807 = vmatpush3.xpose.msk.msra.mxu0 %vm564_vm2, %v2229_v33 }
 0xed4   : > { %2809 = vmatmul.mubr.msk.f32.vlgmr.msra.gmra.mrb[20].mxu0 %vm564_vm2, %v2111_v34 }
 0xed5   : > { %2813 = vmatprep.mubr.msk.f32.mxu0 %vm564_vm2, %v265_v35 }
 0xfa7   : > { %v2302_v36 = vpop.f32.mrb[20].mxu0 }
 0xfa8   : > { %v2810_v38 = vpop.f32.mrb[21].mxu0  ;;  %2811 = vmatprep.subr.mxu0 %v2302_v36 }
 0xfa9   : > { %2812 = vmatpush3.msra.mxu0 %v2302_v36 }
 0xfaa   : > { %2814 = vmatmul.mubr.msk.f32.vlgmr.msra.gmra.mrb[2].mxu0 %vm564_vm2, %v266_v37 }
 0xfab   : > { %2816 = vmatprep.mubr.msk.f32.mxu0 %vm564_vm2, %v267_v39 }
 0xfae   : > { %2817 = vmatmul.mubr.msk.f32.gmra.mrb[4].mxu0 %vm564_vm2, %v268_v40 }
0x107d   : > { %v2815_v47 = vpop.f32.mrb[2].mxu0 }
0x107e   : > { %v2891_v48 = vadd.f32 %v2815_v47, %v294_v44  ;;  %v2384_v49 = vpop.f32.mrb[3].mxu0 }
0x107f   : > { %v2892_v50 = vadd.f32 %v2384_v49, %v293_v46 }
0x1080   : > { %2408 = vst.msk [vmem:[%s224_s26 + $0x8] sm:$0xff] %vm564_vm2, %v2891_v48 }
0x1081   : > { %2407 = vst.msk [vmem:[%s224_s26] sm:$0xff] %vm564_vm2, %v2892_v50  ;;  %v2818_v6 = vpop.f32.mrb[4].mxu0 }
0x1082   : > { %v2893_v53 = vadd.f32 %v2818_v6, %v296_v51  ;;  %v2394_v5 = vpop.f32.mrb[5].mxu0 }
0x1083   : > { %v2894_v54 = vadd.f32 %v2394_v5, %v295_v52 }
0x1084   : > { %2410 = vst.msk [vmem:[%s224_s26 + $0x18] sm:$0xff] %vm564_vm2, %v2893_v53 }
0x1085   : > { %2409 = vst.msk [vmem:[%s224_s26 + $0x10] sm:$0xff] %vm564_vm2, %v2894_v54 }
0x1086 PF: > { %s15_s18 = sadd.s32 1, %s2943_s18  }
0x1087   : > { %p12_p4 = scmp.ge.s32.totalorder %s15_s18, 4  }
0x1089   :  { %14 = sbr.rel (!%p12_p4) target bundleno = 1 (0x1), region = 70 }

</bundles_post_ra>
